<compile_context>
chip_gen: v5e
topology: v5e:2x2
jax: 0.10.0
libtpu: 0.0.40
codegen_flags: <defaults>
</compile_context>

<pallas_src>
import functools

import jax
import jax.numpy as jnp
from jax.experimental import pallas as pl
from jax.experimental.pallas import tpu as pltpu


# ----------------------------- Pallas kernel -----------------------------

def _flow_kernel(num_layers, num_hidden,
                 x_ref,                 # (D, TB)        feature-major input tile
                 w0_ref,                # (2H, D+1)      this block's fused layer-0 (bias folded)
                 wh_ref,                # (NL, 2H, 2H+1) block-diagonal hidden weights (bias folded)
                 wo_ref,                # (2D, 2H+1)     block-diagonal output weights (bias folded)
                 out_ref, logdet_ref,   # (D, TB), (1, TB)
                 x_sc, ld_sc):          # VMEM scratch: (D, TB) f32, (1, TB) f32
    H = num_hidden
    D, TB = x_ref.shape
    blk = pl.program_id(1)

    # Carry x / logdet across the (inner, "arbitrary") block axis in VMEM scratch.
    @pl.when(blk == 0)
    def _():
        x_sc[...] = x_ref[...].astype(jnp.float32)
        ld_sc[...] = jnp.zeros_like(ld_sc)

    x = x_sc[...]

    # mask for block `blk`: torch.arange(D) % 2 flipped every block  ==  (d + blk) % 2.
    row = jax.lax.broadcasted_iota(jnp.int32, (D, TB), 0)
    mask = ((row + blk) % 2).astype(jnp.float32)
    inv_mask = 1.0 - mask

    ones_row = jnp.ones((1, TB), jnp.float32)

    # ---- fused layer-0 of both nets (bias folded): (2H, D+1) @ (D+1, TB) ----
    a = jnp.concatenate([x * mask, ones_row], axis=0)                  # (D+1, TB)
    z = jnp.dot(w0_ref[...], a.astype(w0_ref.dtype),
                preferred_element_type=jnp.float32)                    # (2H, TB)

    # ---- hidden layers: stacked activation, block-diagonal weights ----
    for l in range(num_layers):
        a = jnp.concatenate([jnp.maximum(z[:H], 0.0),                  # translate: ReLU
                             jnp.tanh(z[H:]),                          # scale:     Tanh
                             ones_row], axis=0)                        # (2H+1, TB)
        z = jnp.dot(wh_ref[l], a.astype(wh_ref.dtype),
                    preferred_element_type=jnp.float32)                # (2H, TB)

    # ---- fused output layers + coupling update (mode='direct') ----
    a = jnp.concatenate([jnp.maximum(z[:H], 0.0),
                         jnp.tanh(z[H:]),
                         ones_row], axis=0)                            # (2H+1, TB)
    z = jnp.dot(wo_ref[...], a.astype(wo_ref.dtype),
                preferred_element_type=jnp.float32)                    # (2D, TB)

    t = z[:D] * inv_mask
    log_s = z[D:] * inv_mask

    x = x * jnp.exp(log_s) + t
    x_sc[...] = x
    ld_sc[...] = ld_sc[...] + jnp.sum(log_s, axis=0, keepdims=True)    # (1, TB)

    @pl.when(blk == pl.num_programs(1) - 1)
    def _():
        out_ref[...] = x.astype(out_ref.dtype)
        logdet_ref[...] = ld_sc[...]


# ----------------------------- wrapper helpers -----------------------------

def _pick_batch_tile(batch):
    # Largest lane tile (amortizes per-step overhead & MXU push/drain) that still
    # leaves >= 2 batch tiles so both v7x TensorCores get work on the "parallel" axis.
    for t in (512, 256, 128):
        if batch >= 2 * t:
            return t
    return 128


def _padded_block_bytes(shape, itemsize=4, sublane=8, lane=128):
    """Bytes one (8,128)-tiled f32 block actually occupies in VMEM."""
    dims = [int(d) for d in shape if d is not None]
    if not dims:
        return itemsize
    dims[-1] = -(-dims[-1] // lane) * lane
    if len(dims) >= 2:
        dims[-2] = -(-dims[-2] // sublane) * sublane
    n = 1
    for d in dims:
        n *= d
    return n * itemsize


# ----------------------------- wrapper -----------------------------

def single_speed_forward(x, params, *, num_blocks, num_layers,
                         batch_tile=None, weight_dtype=jnp.float32):
    """Direct-mode forward of SingleSpeed. Returns (outputs (B,D), logdets (B,1))."""
    B, D = x.shape
    H = params["tW0"].shape[-1]
    NB, NL = num_blocks, num_layers
    f32 = jnp.float32

    # ---- wrapper-side packing: W -> W^T (feature-major), bias folded as a trailing
    #      column, translate/scale fused (layer-0 stacked; hidden/output block-diag). ----
    tW0t = jnp.swapaxes(params["tW0"], -1, -2)                          # (NB, H, D)
    sW0t = jnp.swapaxes(params["sW0"], -1, -2)
    w0 = jnp.concatenate([
        jnp.concatenate([tW0t, params["tb0"][..., None]], axis=-1),
        jnp.concatenate([sW0t, params["sb0"][..., None]], axis=-1),
    ], axis=-2).astype(weight_dtype)                                    # (NB, 2H, D+1)

    zH = jnp.zeros((NB, NL, H, H), f32)
    tWht = jnp.swapaxes(params["tWh"], -1, -2)                          # (NB, NL, H, H)
    sWht = jnp.swapaxes(params["sWh"], -1, -2)
    wh = jnp.concatenate([
        jnp.concatenate([tWht, zH, params["tbh"][..., None]], axis=-1),
        jnp.concatenate([zH, sWht, params["sbh"][..., None]], axis=-1),
    ], axis=-2).astype(weight_dtype)                                    # (NB, NL, 2H, 2H+1)

    zD = jnp.zeros((NB, D, H), f32)
    tWot = jnp.swapaxes(params["tWo"], -1, -2)                          # (NB, D, H)
    sWot = jnp.swapaxes(params["sWo"], -1, -2)
    wo = jnp.concatenate([
        jnp.concatenate([tWot, zD, params["tbo"][..., None]], axis=-1),
        jnp.concatenate([zD, sWot, params["sbo"][..., None]], axis=-1),
    ], axis=-2).astype(weight_dtype)                                    # (NB, 2D, 2H+1)

    # ---- batch tiling: feature-major activations, batch on lanes ----
    if batch_tile is None:
        batch_tile = _pick_batch_tile(B)
    TB = int(batch_tile)
    Bp = int(pl.cdiv(B, TB)) * TB
    xt = jnp.transpose(x).astype(f32)                                   # (D, B)
    if Bp != B:
        xt = jnp.pad(xt, ((0, 0), (0, Bp - B)))
    ntiles = Bp // TB
    grid = (ntiles, NB)                                                 # block axis innermost

    kernel = functools.partial(_flow_kernel, NL, H)

    # ---- VMEM budget from (8,128)-padded block shapes, generation-aware cap ----
    pipelined_blocks = [(D, TB), (2 * H, D + 1), (NL, 2 * H, 2 * H + 1),
                        (2 * D, 2 * H + 1), (D, TB), (1, TB)]
    scratch_blocks = [(D, TB), (1, TB)]
    work_blocks = [(2 * H + 1, TB)] * 8                                 # live intermediates (generous)
    vmem_needed = (2 * sum(_padded_block_bytes(s) for s in pipelined_blocks)
                   + sum(_padded_block_bytes(s) for s in scratch_blocks)
                   + sum(_padded_block_bytes(s) for s in work_blocks)
                   + (4 << 20))
    try:
        vmem_cap = int(0.85 * pltpu.get_tpu_info().vmem_capacity_bytes)
    except Exception:
        vmem_cap = 64 * 1024 * 1024                                     # smallest across v5e/v6e/v7x
    vmem_limit = int(min(max(32 * 1024 * 1024, vmem_needed), vmem_cap))

    # ---- advisory cost ----
    steps = ntiles * NB
    flops = steps * 2 * TB * (2 * H * (D + 1) + NL * 2 * H * (2 * H + 1) + 2 * D * (2 * H + 1))
    transcendentals = steps * TB * ((NL + 1) * H + D)                   # tanh + exp
    weight_bytes = sum(int(a.size) * a.dtype.itemsize for a in (w0, wh, wo))
    io_bytes = 4 * (2 * D * Bp + Bp)
    cost = pl.CostEstimate(flops=int(flops), transcendentals=int(transcendentals),
                           bytes_accessed=int(io_bytes + ntiles * weight_bytes))

    out_t, logdet_t = pl.pallas_call(
        kernel,
        out_shape=(jax.ShapeDtypeStruct((D, Bp), f32),
                   jax.ShapeDtypeStruct((1, Bp), f32)),
        grid=grid,
        in_specs=[
            pl.BlockSpec((D, TB), lambda i, b: (0, i)),                         # x tile
            pl.BlockSpec((None, 2 * H, D + 1), lambda i, b: (b, 0, 0)),          # w0[blk]
            pl.BlockSpec((None, NL, 2 * H, 2 * H + 1), lambda i, b: (b, 0, 0, 0)),  # wh[blk]
            pl.BlockSpec((None, 2 * D, 2 * H + 1), lambda i, b: (b, 0, 0)),      # wo[blk]
        ],
        out_specs=(pl.BlockSpec((D, TB), lambda i, b: (0, i)),
                   pl.BlockSpec((1, TB), lambda i, b: (0, i))),
        scratch_shapes=[pltpu.VMEM((D, TB), f32),       # carried x
                        pltpu.VMEM((1, TB), f32)],      # carried logdet
        compiler_params=pltpu.CompilerParams(
            dimension_semantics=("parallel", "arbitrary"),   # batch tiles split across TCs
            vmem_limit_bytes=vmem_limit),
        cost_estimate=cost,
    )(xt, w0, wh, wo)

    out = jnp.transpose(out_t[:, :B])                                   # (B, D)
    logdet = jnp.transpose(logdet_t[:, :B])                             # (B, 1)
    return out, logdet


# ----------------------------- params + reference -----------------------------

def make_params(key, num_inputs, num_hidden, num_blocks, num_layers):
    D, H, NB, NL = num_inputs, num_hidden, num_blocks, num_layers
    ks = jax.random.split(key, 12)
    w, b = 0.3, 0.1
    return {
        "sW0": w * jax.random.normal(ks[0], (NB, D, H), jnp.float32),
        "sb0": b * jax.random.normal(ks[1], (NB, H), jnp.float32),
        "sWh": w * jax.random.normal(ks[2], (NB, NL, H, H), jnp.float32),
        "sbh": b * jax.random.normal(ks[3], (NB, NL, H), jnp.float32),
        "sWo": w * jax.random.normal(ks[4], (NB, H, D), jnp.float32),
        "sbo": b * jax.random.normal(ks[5], (NB, D), jnp.float32),
        "tW0": w * jax.random.normal(ks[6], (NB, D, H), jnp.float32),
        "tb0": b * jax.random.normal(ks[7], (NB, H), jnp.float32),
        "tWh": w * jax.random.normal(ks[8], (NB, NL, H, H), jnp.float32),
        "tbh": b * jax.random.normal(ks[9], (NB, NL, H), jnp.float32),
        "tWo": w * jax.random.normal(ks[10], (NB, H, D), jnp.float32),
        "tbo": b * jax.random.normal(ks[11], (NB, D), jnp.float32),
    }


def reference_forward(x, p, *, num_blocks, num_layers):
    """Pure-JAX reference mirroring CouplingLayer/FlowSequential (mode='direct')."""
    B, D = x.shape
    mask = (jnp.arange(D) % 2).astype(jnp.float32)[None, :]
    logdet = jnp.zeros((B, 1), jnp.float32)
    for blk in range(num_blocks):
        m = mask if blk % 2 == 0 else 1.0 - mask
        masked = x * m
        h = jnp.maximum(masked @ p["tW0"][blk] + p["tb0"][blk], 0.0)
        for l in range(num_layers):
            h = jnp.maximum(h @ p["tWh"][blk, l] + p["tbh"][blk, l], 0.0)
        t = (h @ p["tWo"][blk] + p["tbo"][blk]) * (1.0 - m)
        g = jnp.tanh(masked @ p["sW0"][blk] + p["sb0"][blk])
        for l in range(num_layers):
            g = jnp.tanh(g @ p["sWh"][blk, l] + p["sbh"][blk, l])
        log_s = (g @ p["sWo"][blk] + p["sbo"][blk]) * (1.0 - m)
        x = x * jnp.exp(log_s) + t
        logdet = logdet + jnp.sum(log_s, axis=-1, keepdims=True)
    return x, logdet


# ----------------------------- main -----------------------------

if __name__ == "__main__":
    num_inputs = 8     # D
    num_hidden = 32    # H
    num_blocks = 2
    num_layers = 2
    batch = 256        # -> batch_tile=128, grid=(2, NB): both v7x cores busy

    key = jax.random.PRNGKey(0)
    k_x, k_p = jax.random.split(key)
    x = jax.random.normal(k_x, (batch, num_inputs), jnp.float32)
    params = make_params(k_p, num_inputs, num_hidden, num_blocks, num_layers)

    fwd = jax.jit(functools.partial(single_speed_forward,
                                    num_blocks=num_blocks, num_layers=num_layers))
    out, logdet = fwd(x, params)
    out = jax.block_until_ready(out)
    logdet = jax.block_until_ready(logdet)

    ref_out, ref_logdet = reference_forward(x, params,
                                            num_blocks=num_blocks,
                                            num_layers=num_layers)
    assert out.shape == (batch, num_inputs)
    assert logdet.shape == (batch, 1)
    assert jnp.allclose(out, ref_out, atol=1e-5, rtol=1e-5)
    assert jnp.allclose(logdet, ref_logdet, atol=1e-5, rtol=1e-5)

    print("KERNEL_OK")
</pallas_src>

<mosaic_0001>
module attributes {stable_mosaic.version = 11 : i64} {
  func.func @_flow_kernel(%arg0: i32, %arg1: i32, %arg2: memref<8x128xf32, #tpu.memory_space<vmem>>, %arg3: memref<1x64x9xf32, #tpu.memory_space<vmem>>, %arg4: memref<1x2x64x65xf32, #tpu.memory_space<vmem>>, %arg5: memref<1x16x65xf32, #tpu.memory_space<vmem>>, %arg6: memref<8x128xf32, #tpu.memory_space<vmem>>, %arg7: memref<1x128xf32, #tpu.memory_space<vmem>>, %arg8: memref<8x128xf32, #tpu.memory_space<vmem>>, %arg9: memref<1x128xf32, #tpu.memory_space<vmem>>) attributes {dimension_semantics = [#tpu.dimension_semantics<parallel>, #tpu.dimension_semantics<arbitrary>], iteration_bounds = array<i64: 2, 2>, scalar_prefetch = 0 : i64, scratch_operands = 2 : i64, tpu.core_type = #tpu.core_type<tc>, window_params = [{transform_indices = @transform_0, window_bounds = array<i64: 8, 128>}, {transform_indices = @transform_1, window_bounds = array<i64: 1, 64, 9>}, {transform_indices = @transform_2, window_bounds = array<i64: 1, 2, 64, 65>}, {transform_indices = @transform_3, window_bounds = array<i64: 1, 16, 65>}, {transform_indices = @transform_4, window_bounds = array<i64: 8, 128>}, {transform_indices = @transform_5, window_bounds = array<i64: 1, 128>}]} {
    %c0_i32 = arith.constant 0 : i32
    %0 = arith.cmpi eq, %arg1, %c0_i32 : i32
    %1 = arith.extui %0 : i1 to i32
    %c0_i32_0 = arith.constant 0 : i32
    %2 = arith.cmpi ne, %1, %c0_i32_0 : i32
    scf.if %2 {
      %c0_36 = arith.constant 0 : index
      %c0_37 = arith.constant 0 : index
      %75 = vector.load %arg2[%c0_36, %c0_37] : memref<8x128xf32, #tpu.memory_space<vmem>>, vector<8x128xf32>
      %c0_38 = arith.constant 0 : index
      %c0_39 = arith.constant 0 : index
      %76 = vector.load %arg8[%c0_38, %c0_39] : memref<8x128xf32, #tpu.memory_space<vmem>>, vector<8x128xf32>
      tpu.vector_store %arg8[%c0_38, %c0_39], %75 {strides = array<i32>} : memref<8x128xf32, #tpu.memory_space<vmem>>, vector<8x128xf32>,
      %cst_40 = arith.constant 0.000000e+00 : f32
      %77 = vector.broadcast %cst_40 : f32 to vector<1x128xf32>
      %c0_41 = arith.constant 0 : index
      %c0_42 = arith.constant 0 : index
      %78 = vector.load %arg9[%c0_41, %c0_42] : memref<1x128xf32, #tpu.memory_space<vmem>>, vector<1x128xf32>
      tpu.vector_store %arg9[%c0_41, %c0_42], %77 {strides = array<i32>} : memref<1x128xf32, #tpu.memory_space<vmem>>, vector<1x128xf32>,
    } else {
    }
    %c0 = arith.constant 0 : index
    %c0_1 = arith.constant 0 : index
    %3 = vector.load %arg8[%c0, %c0_1] : memref<8x128xf32, #tpu.memory_space<vmem>>, vector<8x128xf32>
    %4 = tpu.iota {dimensions = array<i32: 0>} : vector<8x128xi32>
    %5 = vector.broadcast %arg1 : i32 to vector<8x128xi32>
    %6 = arith.addi %4, %5 : vector<8x128xi32>
    %c2_i32 = arith.constant 2 : i32
    %c0_i32_2 = arith.constant 0 : i32
    %7 = arith.cmpi eq, %c2_i32, %c0_i32_2 : i32
    %c1_i32 = arith.constant 1 : i32
    %8 = arith.select %7, %c1_i32, %c2_i32 : i32
    %9 = vector.broadcast %8 : i32 to vector<8x128xi32>
    %10 = arith.remsi %6, %9 : vector<8x128xi32>
    %c0_i32_3 = arith.constant 0 : i32
    %11 = vector.broadcast %c0_i32_3 : i32 to vector<8x128xi32>
    %12 = arith.cmpi ne, %10, %11 : vector<8x128xi32>
    %c0_i32_4 = arith.constant 0 : i32
    %13 = vector.broadcast %c0_i32_4 : i32 to vector<8x128xi32>
    %14 = arith.cmpi slt, %10, %13 : vector<8x128xi32>
    %c0_i32_5 = arith.constant 0 : i32
    %15 = arith.cmpi slt, %8, %c0_i32_5 : i32
    %16 = vector.broadcast %15 : i1 to vector<8x128xi1>
    %17 = vector.broadcast %16 : vector<8x128xi1> to vector<8x128xi1>
    %18 = arith.xori %14, %17 : vector<8x128xi1>
    %19 = arith.andi %18, %12 : vector<8x128xi1>
    %20 = vector.broadcast %8 : i32 to vector<8x128xi32>
    %21 = arith.addi %10, %20 : vector<8x128xi32>
    %22 = arith.select %19, %21, %10 : vector<8x128xi1>, vector<8x128xi32>
    %23 = arith.sitofp %22 : vector<8x128xi32> to vector<8x128xf32>
    %cst = arith.constant 1.000000e+00 : f32
    %24 = vector.broadcast %cst : f32 to vector<8x128xf32>
    %25 = arith.subf %24, %23 : vector<8x128xf32>
    %cst_6 = arith.constant 1.000000e+00 : f32
    %26 = vector.broadcast %cst_6 : f32 to vector<1x128xf32>
    %27 = arith.mulf %3, %23 : vector<8x128xf32>
    %28 = tpu.concatenate %27, %26 in 0 : vector<8x128xf32>, vector<1x128xf32> -> vector<9x128xf32>
    %c0_7 = arith.constant 0 : index
    %c0_8 = arith.constant 0 : index
    %c0_9 = arith.constant 0 : index
    %29 = vector.load %arg3[%c0_7, %c0_8, %c0_9] : memref<1x64x9xf32, #tpu.memory_space<vmem>>, vector<1x64x9xf32>
    %30 = vector.shape_cast %29 : vector<1x64x9xf32> to vector<64x9xf32>
    %cst_10 = arith.constant dense<0.000000e+00> : vector<64x128xf32>
    %31 = tpu.matmul %30, %28, %cst_10 {dimension_numbers = #tpu.dot_dimension_numbers<[1], [0], [0], [1], [0, 0, 1, 1], [], []>} : vector<64x9xf32>, vector<9x128xf32>, vector<64x128xf32> -> vector<64x128xf32>
    %32 = vector.extract_strided_slice %31 {offsets = [0, 0], sizes = [32, 128], strides = [1, 1]} : vector<64x128xf32> to vector<32x128xf32>
    %cst_11 = arith.constant 0.000000e+00 : f32
    %33 = vector.broadcast %cst_11 : f32 to vector<32x128xf32>
    %34 = arith.maximumf %32, %33 : vector<32x128xf32>
    %35 = vector.extract_strided_slice %31 {offsets = [32, 0], sizes = [32, 128], strides = [1, 1]} : vector<64x128xf32> to vector<32x128xf32>
    %36 = math.tanh %35 : vector<32x128xf32>
    %37 = tpu.concatenate %34, %36, %26 in 0 : vector<32x128xf32>, vector<32x128xf32>, vector<1x128xf32> -> vector<65x128xf32>
    %c0_12 = arith.constant 0 : index
    %c0_13 = arith.constant 0 : index
    %c0_14 = arith.constant 0 : index
    %c0_15 = arith.constant 0 : index
    %38 = vector.load %arg4[%c0_12, %c0_13, %c0_14, %c0_15] : memref<1x2x64x65xf32, #tpu.memory_space<vmem>>, vector<1x1x64x65xf32>
    %39 = vector.shape_cast %38 : vector<1x1x64x65xf32> to vector<64x65xf32>
    %cst_16 = arith.constant dense<0.000000e+00> : vector<64x128xf32>
    %40 = tpu.matmul %39, %37, %cst_16 {dimension_numbers = #tpu.dot_dimension_numbers<[1], [0], [0], [1], [0, 0, 1, 1], [], []>} : vector<64x65xf32>, vector<65x128xf32>, vector<64x128xf32> -> vector<64x128xf32>
    %41 = vector.extract_strided_slice %40 {offsets = [0, 0], sizes = [32, 128], strides = [1, 1]} : vector<64x128xf32> to vector<32x128xf32>
    %cst_17 = arith.constant 0.000000e+00 : f32
    %42 = vector.broadcast %cst_17 : f32 to vector<32x128xf32>
    %43 = arith.maximumf %41, %42 : vector<32x128xf32>
    %44 = vector.extract_strided_slice %40 {offsets = [32, 0], sizes = [32, 128], strides = [1, 1]} : vector<64x128xf32> to vector<32x128xf32>
    %45 = math.tanh %44 : vector<32x128xf32>
    %46 = tpu.concatenate %43, %45, %26 in 0 : vector<32x128xf32>, vector<32x128xf32>, vector<1x128xf32> -> vector<65x128xf32>
    %c0_18 = arith.constant 0 : index
    %c1 = arith.constant 1 : index
    %c0_19 = arith.constant 0 : index
    %c0_20 = arith.constant 0 : index
    %47 = vector.load %arg4[%c0_18, %c1, %c0_19, %c0_20] : memref<1x2x64x65xf32, #tpu.memory_space<vmem>>, vector<1x1x64x65xf32>
    %48 = vector.shape_cast %47 : vector<1x1x64x65xf32> to vector<64x65xf32>
    %cst_21 = arith.constant dense<0.000000e+00> : vector<64x128xf32>
    %49 = tpu.matmul %48, %46, %cst_21 {dimension_numbers = #tpu.dot_dimension_numbers<[1], [0], [0], [1], [0, 0, 1, 1], [], []>} : vector<64x65xf32>, vector<65x128xf32>, vector<64x128xf32> -> vector<64x128xf32>
    %50 = vector.extract_strided_slice %49 {offsets = [0, 0], sizes = [32, 128], strides = [1, 1]} : vector<64x128xf32> to vector<32x128xf32>
    %cst_22 = arith.constant 0.000000e+00 : f32
    %51 = vector.broadcast %cst_22 : f32 to vector<32x128xf32>
    %52 = arith.maximumf %50, %51 : vector<32x128xf32>
    %53 = vector.extract_strided_slice %49 {offsets = [32, 0], sizes = [32, 128], strides = [1, 1]} : vector<64x128xf32> to vector<32x128xf32>
    %54 = math.tanh %53 : vector<32x128xf32>
    %55 = tpu.concatenate %52, %54, %26 in 0 : vector<32x128xf32>, vector<32x128xf32>, vector<1x128xf32> -> vector<65x128xf32>
    %c0_23 = arith.constant 0 : index
    %c0_24 = arith.constant 0 : index
    %c0_25 = arith.constant 0 : index
    %56 = vector.load %arg5[%c0_23, %c0_24, %c0_25] : memref<1x16x65xf32, #tpu.memory_space<vmem>>, vector<1x16x65xf32>
    %57 = vector.shape_cast %56 : vector<1x16x65xf32> to vector<16x65xf32>
    %cst_26 = arith.constant dense<0.000000e+00> : vector<16x128xf32>
    %58 = tpu.matmul %57, %55, %cst_26 {dimension_numbers = #tpu.dot_dimension_numbers<[1], [0], [0], [1], [0, 0, 1, 1], [], []>} : vector<16x65xf32>, vector<65x128xf32>, vector<16x128xf32> -> vector<16x128xf32>
    %59 = vector.extract_strided_slice %58 {offsets = [0, 0], sizes = [8, 128], strides = [1, 1]} : vector<16x128xf32> to vector<8x128xf32>
    %60 = arith.mulf %59, %25 : vector<8x128xf32>
    %61 = vector.extract_strided_slice %58 {offsets = [8, 0], sizes = [8, 128], strides = [1, 1]} : vector<16x128xf32> to vector<8x128xf32>
    %62 = arith.mulf %61, %25 : vector<8x128xf32>
    %63 = math.exp %62 : vector<8x128xf32>
    %64 = arith.mulf %3, %63 : vector<8x128xf32>
    %65 = arith.addf %64, %60 : vector<8x128xf32>
    %c0_27 = arith.constant 0 : index
    %c0_28 = arith.constant 0 : index
    %66 = vector.load %arg8[%c0_27, %c0_28] : memref<8x128xf32, #tpu.memory_space<vmem>>, vector<8x128xf32>
    tpu.vector_store %arg8[%c0_27, %c0_28], %65 {strides = array<i32>} : memref<8x128xf32, #tpu.memory_space<vmem>>, vector<8x128xf32>,
    %c0_29 = arith.constant 0 : index
    %c0_30 = arith.constant 0 : index
    %67 = vector.load %arg9[%c0_29, %c0_30] : memref<1x128xf32, #tpu.memory_space<vmem>>, vector<1x128xf32>
    %cst_31 = arith.constant dense<0.000000e+00> : vector<128xf32>
    %68 = vector.multi_reduction <add>, %62, %cst_31 [0] : vector<8x128xf32> to vector<128xf32>
    %69 = vector.shape_cast %68 : vector<128xf32> to vector<1x128xf32>
    %70 = arith.addf %67, %69 : vector<1x128xf32>
    %c0_32 = arith.constant 0 : index
    %c0_33 = arith.constant 0 : index
    %71 = vector.load %arg9[%c0_32, %c0_33] : memref<1x128xf32, #tpu.memory_space<vmem>>, vector<1x128xf32>
    tpu.vector_store %arg9[%c0_32, %c0_33], %70 {strides = array<i32>} : memref<1x128xf32, #tpu.memory_space<vmem>>, vector<1x128xf32>,
    %c1_i32_34 = arith.constant 1 : i32
    %72 = arith.cmpi eq, %arg1, %c1_i32_34 : i32
    %73 = arith.extui %72 : i1 to i32
    %c0_i32_35 = arith.constant 0 : i32
    %74 = arith.cmpi ne, %73, %c0_i32_35 : i32
    scf.if %74 {
      %c0_36 = arith.constant 0 : index
      %c0_37 = arith.constant 0 : index
      %75 = vector.load %arg6[%c0_36, %c0_37] : memref<8x128xf32, #tpu.memory_space<vmem>>, vector<8x128xf32>
      tpu.vector_store %arg6[%c0_36, %c0_37], %65 {strides = array<i32>} : memref<8x128xf32, #tpu.memory_space<vmem>>, vector<8x128xf32>,
      %c0_38 = arith.constant 0 : index
      %c0_39 = arith.constant 0 : index
      %76 = vector.load %arg9[%c0_38, %c0_39] : memref<1x128xf32, #tpu.memory_space<vmem>>, vector<1x128xf32>
      %c0_40 = arith.constant 0 : index
      %c0_41 = arith.constant 0 : index
      %77 = vector.load %arg7[%c0_40, %c0_41] : memref<1x128xf32, #tpu.memory_space<vmem>>, vector<1x128xf32>
      tpu.vector_store %arg7[%c0_40, %c0_41], %76 {strides = array<i32>} : memref<1x128xf32, #tpu.memory_space<vmem>>, vector<1x128xf32>,
    } else {
    }
    return
  }
  func.func @transform_0(%arg0: i32, %arg1: i32) -> (i32, i32) {
    %c0_i32 = arith.constant 0 : i32
    %c0_i32_0 = arith.constant 0 : i32
    return %c0_i32, %arg0 : i32, i32
  }
  func.func @transform_1(%arg0: i32, %arg1: i32) -> (i32, i32, i32) {
    %c0_i32 = arith.constant 0 : i32
    %c0_i32_0 = arith.constant 0 : i32
    %c0_i32_1 = arith.constant 0 : i32
    return %arg1, %c0_i32, %c0_i32_0 : i32, i32, i32
  }
  func.func @transform_2(%arg0: i32, %arg1: i32) -> (i32, i32, i32, i32) {
    %c0_i32 = arith.constant 0 : i32
    %c0_i32_0 = arith.constant 0 : i32
    %c0_i32_1 = arith.constant 0 : i32
    %c0_i32_2 = arith.constant 0 : i32
    return %arg1, %c0_i32, %c0_i32_0, %c0_i32_1 : i32, i32, i32, i32
  }
  func.func @transform_3(%arg0: i32, %arg1: i32) -> (i32, i32, i32) {
    %c0_i32 = arith.constant 0 : i32
    %c0_i32_0 = arith.constant 0 : i32
    %c0_i32_1 = arith.constant 0 : i32
    return %arg1, %c0_i32, %c0_i32_0 : i32, i32, i32
  }
  func.func @transform_4(%arg0: i32, %arg1: i32) -> (i32, i32) {
    %c0_i32 = arith.constant 0 : i32
    %c0_i32_0 = arith.constant 0 : i32
    return %c0_i32, %arg0 : i32, i32
  }
  func.func @transform_5(%arg0: i32, %arg1: i32) -> (i32, i32) {
    %c0_i32 = arith.constant 0 : i32
    %c0_i32_0 = arith.constant 0 : i32
    return %c0_i32, %arg0 : i32, i32
  }
}

</mosaic_0001>

<bundles_post_ra>
// kernel: single_speed_forward.1
= control target key start
LH: loop header
LB: loop body
LE: loop exit
PB: predicated region body
PF: predicated region fallthrough
CT: control target
= control target key end

     0   :  { %11 = vsyncpa [#allocation5], 0  ;;  %s1349_s0 = inlined_call_operand.vmem [shape: f32[8,256], index: 0, kind: input, shape index: {}]   ;;  %s1350_s1 = inlined_call_operand.vmem [shape: f32[2,64,9], index: 1, kind: input, shape index: {}]   ;;  %s1351_s2 = inlined_call_operand.vmem [shape: f32[2,2,64,65], index: 2, kind: input, shape index: {}]   ;;  %s1352_s3 = inlined_call_operand.vmem [shape: f32[2,16,65], index: 3, kind: input, shape index: {}]   ;;  %s1353_s4 = inlined_call_operand.hbm [shape: f32[8,256], index: 4, kind: output, shape index: {0}]   ;;  %s1354_s5 = inlined_call_operand.hbm [shape: f32[1,256], index: 5, kind: output, shape index: {1}]  }
   0x1   :  { %13 = vsyncpa [#allocation5 + $0x1], 0 }
   0x2   :  { %14 = vsyncpa [#allocation7], 0 }
   0x3   :  { %16 = vsyncpa [#allocation7 + $0x1], 0  ;;  %s1124_s18 = smov 0   ;;  %s1126_s19 = smov 0  }
   0x4   :  { %s1128_s20 = smov 0   ;;  %s1130_s21 = smov 0  }
   0x5   :  { %s1132_s22 = smov 0   ;;  %s1134_s23 = smov 0  }
   0x6   :  { %s1136_s24 = smov 0   ;;  %s1138_s25 = smov 0  }
   0x7 LB: > { %1360 = sst [smem:[#allocation10_spill]] %s1066_s19  ;;  %s800_s26 = sadd.s32 4294967295, %s1090_s25   ;;  %s1090_s25 = sphi %s1138_s25, %s22_s25   ;;  %s1086_s24 = sphi %s1136_s24, %s1375_s24   ;;  %s1082_s23 = sphi %s1134_s23, %s1374_s23   ;;  %s1078_s22 = sphi %s1132_s22, %s1373_s22   ;;  %s1074_s21 = sphi %s1130_s21, %s1372_s21   ;;  %s1070_s20 = sphi %s1128_s20, %s1371_s20   ;;  %s1066_s19 = sphi %s1126_s19, %s1370_s19   ;;  %s1062_s18 = sphi %s1124_s18, %s1369_s18  }
   0x8   : > { %1361 = sst [smem:[#allocation11_spill]] %s1070_s20  ;;  %s801_s27 = sadd.s32 4294967294, %s1090_s25  }
   0x9   : > { %1362 = sst [smem:[#allocation12_spill]] %s1082_s23  ;;  %s31_s28 = sadd.s32 1, %s1082_s23 }
   0xa   : > { %1363 = sst [smem:[#allocation13_spill]] %s1086_s24  ;;  %p32_p0 = scmp.ge.s32.totalorder %s31_s28, 2 }
   0xb   : > { %s34_s29 = sadd.s32 1, %s1086_s24  ;;  %p155_p1 = scmp.ne.s32.totalorder %s1070_s20, %s1066_s19 }
   0xc   : > { %p156_p2 = scmp.eq.s32.totalorder %s800_s26, 3  ;;  %s1377_s28 = smov (%p32_p0, %s31_s28), 0 }
   0xd   : > { %1364 = sst [smem:[#allocation14_spill]] %s1377_s28  ;;  %s1379_s29 = smov (!%p32_p0, %s34_s29), %s1086_s24 }
   0xe   : > { %p1173_p3 = por %p156_p2, %p155_p1  ;;  %p161_p4 = scmp.ne.s32.totalorder %s1066_s19, %s1062_s18 }
   0xf   : > { %p36_p5 = scmp.ge.s32.totalorder %s1379_s29, 2  ;;  %p162_p6 = scmp.eq.s32.totalorder %s801_s27, 3 }
  0x10   : > { %p804_p7 = scmp.ge.s32.totalorder %s1090_s25, 1  ;;  %p237_p8 = scmp.lt.s32.totalorder %s1090_s25, 5 }
  0x11   : > { %s1381_s29 = smov (%p36_p5, %s1379_s29), 0  ;;  %p1183_p9 = por %p162_p6, %p161_p4 }
  0x12   : > { %1366 = sst [smem:[#allocation15_spill]] %s1381_s29  ;;  %p238_p10 = pnand %p804_p7, %p237_p8 }
  0x13   : > { %s142_s7 = ssub.s32 %s1086_s24, %s1381_s29  ;;  %s145_s8 = sadd.s32 1, %s1070_s20 }
  0x14   : > { %p143_p11 = scmp.eq.s32.totalorder %s142_s7, 0  ;;  %241 = sbr.rel (%p238_p10) target bundleno = 874 (0x36a), region = 36 }
  0x15   : > { %s1194_s10 = sand.u32 (!%p238_p10), 1, %s1066_s19   ;;  %p283_p12 = scmp.lt.s32.totalorder (!%p238_p10), %s1078_s22, 1 }
  0x16   : > { %s1191_s9 = scalar_select %p143_p11, %s1070_s20, %s145_s8  }
  0x17   : > { %s805_s11 = sshll.u32 (!%p238_p10), %s1194_s10, 3  ;;  %p287_p13 = scmp.lt.s32.totalorder (!%p238_p10), %s1074_s21, 1 }
  0x18   : > { %1368 = sst [smem:[#allocation16_spill]] %s1191_s9  ;;  %s1219_s15 = scalar_lea.vmem (!%p238_p10), [#allocation4], %s805_s11 }
  0x19   : > { %s284_s12 = scalar_select %p283_p12, %s1078_s22, 1 }
  0x1a   : > { %s288_s13 = scalar_select %p287_p13, %s1074_s21, 1 }
  0x1b   : > { %s806_s14 = sshll.u32 %s284_s12, 3  ;;  %p813_p0 = scmp.ne.s32.totalorder %s1074_s21, 0 }
  0x1c   : > { %s286_s17 = scalar_lea.vmem %s1349_s0, %s806_s14  ;;  %s857_s26 = sshll.u32 %s288_s13, 6 }
  0x1d   : > { %s1207_s8 = scalar_lea.vmem %s1350_s1, %s857_s26  ;;  %s858_s29 = sshll.u32 %s288_s13, 7 }
  0x1e   : > { %s1212_s23 = scalar_lea.vmem %s1351_s2, %s858_s29  ;;  %s859_s9 = sshll.u32 %s288_s13, 4 }
  0x1f   : > { %s1217_s12 = scalar_lea.vmem %s1352_s3, %s859_s9  ;;  %s282_s14 = scalar_lea.vmem [#allocation6], %s1194_s10 }
  0x20   : > { %305 = sbr.rel (%p813_p0) target bundleno = 40 (0x28), region = 40 }
  0x25   : > { %v306_v0 = vld [vmem:[%s286_s17] sm:$0xff]  ;;  %v1092_v1 = vmov 0.0  }
  0x26   : > { %307 = vst [vmem:[#allocation2] sm:$0xff] %v306_v0 }
  0x27   : > { %308 = vst [vmem:[#allocation3] sm:$0x1] %v1092_v1 }
  0x28 PF: > { %vm362_vm0 = vcmask 1040384   ;;  %v310_v2 = vlaneseq  ;;  %v1093_v3 = vmov 1.0   ;;  %v312_v4 = vstv %s1074_s21  ;;  %v329_v17 = vld [vmem:[%s1207_s8] sm:$0xff]  ;;  %v330_v18 = vld [vmem:[%s1207_s8 + $0x8] sm:$0xff]  ;;  %v331_v19 = vld [vmem:[%s1207_s8 + $0x10] sm:$0xff]  ;;  %p852_p1 = scmp.ne.s32.totalorder %s1074_s21, 1 }
  0x29   : > { %814 = vmatpush.msk.msra.mxu0 %vm362_vm0, %v1093_v3  ;;  %823 = vmatpush.msk.msra.mxu1 %vm362_vm0, %v1093_v3  ;;  %vm337_vm5 = vcmask 72704   ;;  %v332_v20 = vld [vmem:[%s1207_s8 + $0x18] sm:$0xff]  ;;  %v333_v21 = vld [vmem:[%s1207_s8 + $0x20] sm:$0xff]  ;;  %v334_v22 = vld [vmem:[%s1207_s8 + $0x28] sm:$0xff]  ;;  %vm423_vm6 = vcmask 531456  }
  0x2a   : > { %v311_v5 = vshrl.u32 %v310_v2, 7  ;;  %840 = vmatpush.msk.msra.mxu2 %vm362_vm0, %v1093_v3  ;;  %849 = vmatpush.msk.msra.mxu3 %vm362_vm0, %v1093_v3  ;;  %v335_v23 = vld [vmem:[%s1207_s8 + $0x30] sm:$0xff]  ;;  %v336_v24 = vld [vmem:[%s1207_s8 + $0x38] sm:$0xff]  ;;  %v415_v41 = vld [vmem:[%s1212_s23] sm:$0xff] }
  0x2b   : > { %v416_v42 = vld [vmem:[%s1212_s23 + $0x8] sm:$0xff]  ;;  %v417_v43 = vld [vmem:[%s1212_s23 + $0x10] sm:$0xff]  ;;  %v418_v44 = vld [vmem:[%s1212_s23 + $0x18] sm:$0xff] }
  0x2c   : > { %v313_v6 = vadd.s32 %v312_v4, %v311_v5  ;;  %v419_v45 = vld [vmem:[%s1212_s23 + $0x20] sm:$0xff]  ;;  %v420_v46 = vld [vmem:[%s1212_s23 + $0x28] sm:$0xff]  ;;  %v421_v47 = vld [vmem:[%s1212_s23 + $0x30] sm:$0xff] }
  0x2d   : > { %v1224_v13 = vld [vmem:[#allocation2] sm:$0xff]  ;;  %v422_v48 = vld [vmem:[%s1212_s23 + $0x38] sm:$0xff]  ;;  %v833_v2 = vld [vmem:[%s1212_s23 + $0x48] sm:$0xff] }
  0x2e   : > { %vm314_vm1 = vcmp.lt.s32.totalorder %v313_v6, 0  ;;  %v315_v7 = vsub.s32 0, %v313_v6  ;;  %v832_v1 = vld [vmem:[%s1212_s23 + $0x40] sm:$0xff]  ;;  %v834_v3 = vld [vmem:[%s1212_s23 + $0x50] sm:$0xff]  ;;  %v835_v4 = vld [vmem:[%s1212_s23 + $0x58] sm:$0xff] }
  0x2f   : > { %v836_v5 = vld [vmem:[%s1212_s23 + $0x60] sm:$0xff] }
  0x30   : > { %v316_v8 = vsel %vm314_vm1, %v315_v7, %v313_v6  ;;  %v837_v6 = vld [vmem:[%s1212_s23 + $0x68] sm:$0xff]  ;;  %v838_v7 = vld [vmem:[%s1212_s23 + $0x70] sm:$0xff] }
  0x31   : > { %v318_v9 = vand.u32 1, %v316_v8  ;;  %v839_v8 = vld [vmem:[%s1212_s23 + $0x78] sm:$0xff] }
  0x33   : > { %v319_v10 = vsub.s32 0, %v318_v9 }
  0x35   : > { %v320_v11 = vsel %vm314_vm1, %v319_v10, %v318_v9 }
  0x36   : > { %vm321_vm2 = vcmp.ne.s32.totalorder %v320_v11, 0  ;;  %vm322_vm3 = vcmp.lt.s32.totalorder %v320_v11, 0  ;;  %v324_v12 = vadd.s32 2, %v320_v11 }
  0x37   : > { %vm323_vm4 = vmand %vm322_vm3, %vm321_vm2 }
  0x38   : > { %v325_v14 = vsel %vm323_vm4, %v324_v12, %v320_v11 }
  0x39   : > { %v1226_v15 = vcvt.s32.f32 %v325_v14 }
  0x3b   : > { %v328_v16 = vmul.f32 %v1226_v15, %v1224_v13 }
  0x3d   : > { %381 = vmatpush.msra.mxu0 %v328_v16 }
  0x3e   : > { %815 = vmatmul.msk.f32.vlgmr.msra.gmra.mxu0 %vm337_vm5, %v329_v17 }
  0x46   : > { %816 = vmatmul.msk.f32.gmra.mxu0 %vm337_vm5, %v330_v18 }
  0x4e   : > { %817 = vmatmul.msk.f32.gmra.mxu0 %vm337_vm5, %v331_v19 }
  0x56   : > { %818 = vmatmul.msk.f32.gmra.mxu0 %vm337_vm5, %v332_v20 }
  0x5e   : > { %819 = vmatmul.msk.f32.gmra.mxu0 %vm337_vm5, %v333_v21 }
  0x66   : > { %820 = vmatmul.msk.f32.gmra.mxu0 %vm337_vm5, %v334_v22 }
  0x6e   : > { %821 = vmatmul.msk.f32.gmra.mxu0 %vm337_vm5, %v335_v23 }
  0x76   : > { %822 = vmatmul.msk.f32.gmra.mxu0 %vm337_vm5, %v336_v24 }
  0xbb   : > { %v383_v25 = vpop.f32.mrf.mxu0 }
  0xbc   : > { %v407_v40 = vmax.f32 %v383_v25, 0.0 }
  0xc3   : > { %v386_v26 = vpop.f32.mrf.mxu0 }
  0xc4   : > { %v408_v39 = vmax.f32 %v386_v26, 0.0 }
  0xcb   : > { %v389_v27 = vpop.f32.mrf.mxu0 }
  0xcc   : > { %v409_v38 = vmax.f32 %v389_v27, 0.0  ;;  %v579_v27 = vld [vmem:[%s1217_s12] sm:$0xff] }
  0xd3   : > { %v392_v28 = vpop.f32.mrf.mxu0 }
  0xd4   : > { %v410_v37 = vmax.f32 %v392_v28, 0.0  ;;  %v580_v28 = vld [vmem:[%s1217_s12 + $0x8] sm:$0xff] }
  0xdb   : > { %v395_v29 = vpop.f32.mrf.mxu0 }
  0xe3   : > { %v398_v30 = vpop.f32.mrf.mxu0 }
  0xeb   : > { %v401_v31 = vpop.f32.mrf.mxu0 }
  0xf3   : > { %v404_v32 = vpop.f32.mrf.mxu0 }
  0xf4   : > { %938 = vtanh.f32 %v404_v32 }
  0xf5   : > { %940 = vtanh.f32 %v401_v31 }
  0xf6   : > { %942 = vtanh.f32 %v398_v30  ;;  %v327_v30 = vsub.f32 1.0, %v1226_v15 }
  0xf7   : > { %944 = vtanh.f32 %v395_v29 }
  0xfa   : > { %v939_v33 = vpop.eup %938 }
  0xfb   : > { %456 = vmatpush.msra.mxu1 %v939_v33  ;;  %v941_v34 = vpop.eup %940 }
  0xfc   : > { %v943_v35 = vpop.eup %942 }
  0xfd   : > { %457 = vmatpush.msra.mxu1 %v941_v34  ;;  %v945_v36 = vpop.eup %944 }
  0xff   : > { %458 = vmatpush.msra.mxu1 %v943_v35 }
 0x101   : > { %459 = vmatpush.msra.mxu1 %v945_v36 }
 0x103   : > { %460 = vmatpush.msra.mxu1 %v410_v37 }
 0x105   : > { %461 = vmatpush.msra.mxu1 %v409_v38 }
 0x107   : > { %462 = vmatpush.msra.mxu1 %v408_v39 }
 0x109   : > { %463 = vmatpush.msra.mxu1 %v407_v40 }
 0x10a   : > { %824 = vmatmul.msk.f32.vlgmr.msra.gmra.mxu1 %vm423_vm6, %v415_v41 }
 0x112   : > { %825 = vmatmul.msk.f32.gmra.mxu1 %vm423_vm6, %v416_v42  ;;  %v617_v42 = vld [vmem:[#allocation3] sm:$0x1] }
 0x11a   : > { %826 = vmatmul.msk.f32.gmra.mxu1 %vm423_vm6, %v417_v43 }
 0x122   : > { %827 = vmatmul.msk.f32.gmra.mxu1 %vm423_vm6, %v418_v44 }
 0x12a   : > { %828 = vmatmul.msk.f32.gmra.mxu1 %vm423_vm6, %v419_v45 }
 0x132   : > { %829 = vmatmul.msk.f32.gmra.mxu1 %vm423_vm6, %v420_v46 }
 0x13a   : > { %830 = vmatmul.msk.f32.gmra.mxu1 %vm423_vm6, %v421_v47 }
 0x142   : > { %831 = vmatmul.msk.f32.gmra.mxu1 %vm423_vm6, %v422_v48 }
 0x187   : > { %v465_v49 = vpop.f32.mrf.mxu1 }
 0x188   : > { %v489_v0 = vmax.f32 %v465_v49, 0.0 }
 0x18f   : > { %v468_v50 = vpop.f32.mrf.mxu1 }
 0x190   : > { %v490_v63 = vmax.f32 %v468_v50, 0.0 }
 0x197   : > { %v471_v51 = vpop.f32.mrf.mxu1 }
 0x198   : > { %v491_v62 = vmax.f32 %v471_v51, 0.0 }
 0x19f   : > { %v474_v52 = vpop.f32.mrf.mxu1 }
 0x1a0   : > { %v492_v61 = vmax.f32 %v474_v52, 0.0 }
 0x1a7   : > { %v477_v53 = vpop.f32.mrf.mxu1 }
 0x1af   : > { %v480_v54 = vpop.f32.mrf.mxu1 }
 0x1b7   : > { %v483_v55 = vpop.f32.mrf.mxu1 }
 0x1bf   : > { %v486_v56 = vpop.f32.mrf.mxu1 }
 0x1c0   : > { %946 = vtanh.f32 %v486_v56 }
 0x1c1   : > { %948 = vtanh.f32 %v483_v55 }
 0x1c2   : > { %950 = vtanh.f32 %v480_v54 }
 0x1c3   : > { %952 = vtanh.f32 %v477_v53 }
 0x1c6   : > { %v947_v57 = vpop.eup %946 }
 0x1c7   : > { %538 = vmatpush.msra.mxu2 %v947_v57  ;;  %v949_v58 = vpop.eup %948 }
 0x1c8   : > { %v951_v59 = vpop.eup %950 }
 0x1c9   : > { %539 = vmatpush.msra.mxu2 %v949_v58  ;;  %v953_v60 = vpop.eup %952 }
 0x1cb   : > { %540 = vmatpush.msra.mxu2 %v951_v59 }
 0x1cd   : > { %541 = vmatpush.msra.mxu2 %v953_v60 }
 0x1cf   : > { %542 = vmatpush.msra.mxu2 %v492_v61 }
 0x1d1   : > { %543 = vmatpush.msra.mxu2 %v491_v62 }
 0x1d3   : > { %544 = vmatpush.msra.mxu2 %v490_v63 }
 0x1d5   : > { %545 = vmatpush.msra.mxu2 %v489_v0 }
 0x1d6   : > { %841 = vmatmul.msk.f32.vlgmr.msra.gmra.mxu2 %vm423_vm6, %v832_v1 }
 0x1de   : > { %842 = vmatmul.msk.f32.gmra.mxu2 %vm423_vm6, %v833_v2 }
 0x1e6   : > { %843 = vmatmul.msk.f32.gmra.mxu2 %vm423_vm6, %v834_v3 }
 0x1ee   : > { %844 = vmatmul.msk.f32.gmra.mxu2 %vm423_vm6, %v835_v4 }
 0x1f6   : > { %845 = vmatmul.msk.f32.gmra.mxu2 %vm423_vm6, %v836_v5 }
 0x1fe   : > { %846 = vmatmul.msk.f32.gmra.mxu2 %vm423_vm6, %v837_v6 }
 0x206   : > { %847 = vmatmul.msk.f32.gmra.mxu2 %vm423_vm6, %v838_v7 }
 0x20e   : > { %848 = vmatmul.msk.f32.gmra.mxu2 %vm423_vm6, %v839_v8 }
 0x259   : > { %v547_v9 = vpop.f32.mrf.mxu2 }
 0x25a   : > { %v571_v26 = vmax.f32 %v547_v9, 0.0 }
 0x261   : > { %v550_v10 = vpop.f32.mrf.mxu2 }
 0x262   : > { %v572_v25 = vmax.f32 %v550_v10, 0.0 }
 0x269   : > { %v553_v11 = vpop.f32.mrf.mxu2 }
 0x26a   : > { %v573_v24 = vmax.f32 %v553_v11, 0.0 }
 0x271   : > { %v556_v12 = vpop.f32.mrf.mxu2 }
 0x272   : > { %v574_v23 = vmax.f32 %v556_v12, 0.0 }
 0x279   : > { %v559_v14 = vpop.f32.mrf.mxu2 }
 0x281   : > { %v562_v16 = vpop.f32.mrf.mxu2 }
 0x289   : > { %v565_v17 = vpop.f32.mrf.mxu2 }
 0x291   : > { %v568_v18 = vpop.f32.mrf.mxu2 }
 0x292   : > { %954 = vtanh.f32 %v568_v18 }
 0x293   : > { %956 = vtanh.f32 %v565_v17 }
 0x294   : > { %958 = vtanh.f32 %v562_v16 }
 0x295   : > { %960 = vtanh.f32 %v559_v14 }
 0x298   : > { %v955_v19 = vpop.eup %954 }
 0x299   : > { %595 = vmatpush.msra.mxu3 %v955_v19  ;;  %v957_v20 = vpop.eup %956 }
 0x29a   : > { %v959_v21 = vpop.eup %958 }
 0x29b   : > { %596 = vmatpush.msra.mxu3 %v957_v20  ;;  %v961_v22 = vpop.eup %960 }
 0x29d   : > { %597 = vmatpush.msra.mxu3 %v959_v21 }
 0x29f   : > { %598 = vmatpush.msra.mxu3 %v961_v22 }
 0x2a1   : > { %599 = vmatpush.msra.mxu3 %v574_v23 }
 0x2a3   : > { %600 = vmatpush.msra.mxu3 %v573_v24 }
 0x2a5   : > { %601 = vmatpush.msra.mxu3 %v572_v25 }
 0x2a7   : > { %602 = vmatpush.msra.mxu3 %v571_v26 }
 0x2a8   : > { %850 = vmatmul.msk.f32.vlgmr.msra.gmra.mxu3 %vm423_vm6, %v579_v27 }
 0x2b0   : > { %851 = vmatmul.msk.f32.gmra.mxu3 %vm423_vm6, %v580_v28 }
 0x32b   : > { %v604_v29 = vpop.f32.mrf.mxu3 }
 0x32c   : > { %v610_v40 = vmul.f32 %v604_v29, %v327_v30 }
 0x333   : > { %v607_v31 = vpop.f32.mrf.mxu3 }
 0x334   : > { %v611_v32 = vmul.f32 %v607_v31, %v327_v30 }
 0x336   : > { %v612_v33 = vmul.f32 1.442695, %v611_v32  ;;  %v618_v34 = vrot.slane %v611_v32, 4 }
 0x338   : > { %962 = vpow2.f32 %v612_v33  ;;  %v619_v35 = vadd.f32 %v618_v34, %v611_v32 }
 0x33a   : > { %v620_v36 = vrot.slane %v619_v35, 2 }
 0x33c   : > { %v621_v37 = vadd.f32 %v620_v36, %v619_v35 }
 0x33e   : > { %v963_v38 = vpop.eup %962  ;;  %v622_v39 = vrot.slane %v621_v37, 1 }
 0x33f   : > { %v614_v41 = vmul.f32 %v963_v38, %v1224_v13 }
 0x340   : > { %v623_v43 = vadd.f32 %v622_v39, %v621_v37  ;;  %629 = sbr.rel (%p852_p1) target bundleno = 845 (0x34d), region = 44 }
 0x341   : > { %v615_v44 = vadd.f32 %v614_v41, %v610_v40 }
 0x342   : > { %v624_v45 = vadd.f32 %v623_v43, %v617_v42 }
 0x343   : > { %616 = vst [vmem:[#allocation2] sm:$0xff] %v615_v44 }
 0x344   : > { %625 = vst [vmem:[#allocation3] sm:$0x1] %v624_v45 }
 0x345   : > { %630 = vst [vmem:[%s1219_s15] sm:$0xff] %v615_v44 }
 0x34b   : > { %v631_v15 = vld [vmem:[#allocation3] sm:$0x1] }
 0x34c   : > { %632 = vst [vmem:[%s282_s14] sm:$0x1] %v631_v15 }
 0x34d PF: > { %s854_s19 = sshll.u32 %s1078_s22, 3  ;;  %s650_s28 = sshll.u32 %s1219_s15, 4  ;;  %s651_s28 = int_to_ptr.vmem [resolvable:$true] %s650_s28 }
 0x34e   : > { %s648_s24 = scalar_lea.hbm %s1353_s4, %s854_s19  ;;  %s634_s29 = scalar_lea.sflag [#allocation5], %s1194_s10 }
 0x34f   : > { %s652_s21 = sshll.u32 %s648_s24, 4  ;;  %s984_s17 = scalar_lea.hbm %s1353_s4, 16  ;;  %s653_s21 = int_to_ptr.hbm [resolvable:$true] %s652_s21 }
 0x350   : > { %s978_s9 = sshra.s32 %s653_s21, 4  ;;  %s979_s9 = int_to_ptr.hbm [resolvable:$true] %s978_s9 }
 0x351   : > { %s980_s11 = scalar_lea.hbm %s979_s9, 8  ;;  %p985_p6 = scmp.lt.s32.totalorder %s979_s9, %s1353_s4 }
 0x352   : > { %p981_p2 = scmp.ne.s32.totalorder %s979_s9, %s980_s11  ;;  %p986_p7 = scmp.lt.s32.totalorder %s984_s17, %s980_s11 }
 0x354   : > { %p982_p4 = pnand %p981_p2, %p1173_p3  ;;  %p987_p8 = por %p986_p7, %p985_p6 }
 0x356   : > { %p983_p5 = pneg %p982_p4 }
 0x358   : > { %p988_p10 = pnand %p987_p8, %p983_p5 }
 0x35a   : > { %991 = shalt.err (!%p988_p10)
}
 0x35b   : > { %860 = dma.vmem_to_hbm [thread:$0]  (%p1173_p3), %s651_s28, 128, %s653_s21, %s634_s29  }
 0x35c   : > { %s661_s12 = scalar_lea.hbm %s1354_s5, %s1078_s22  ;;  %s663_s15 = sshll.u32 %s282_s14, 4  ;;  %s664_s15 = int_to_ptr.vmem [resolvable:$true] %s663_s15 }
 0x35d   : > { %s665_s19 = sshll.u32 %s661_s12, 4  ;;  %s639_s20 = scalar_lea.sflag [#allocation7], %s1194_s10  ;;  %s666_s19 = int_to_ptr.hbm [resolvable:$true] %s665_s19 }
 0x35e   : > { %s1006_s23 = sshra.s32 %s666_s19, 4  ;;  %s1012_s28 = scalar_lea.hbm %s1354_s5, 2  ;;  %s1007_s23 = int_to_ptr.hbm [resolvable:$true] %s1006_s23 }
 0x35f   : > { %s1008_s24 = scalar_lea.hbm %s1007_s23, 1  ;;  %p1013_p0 = scmp.lt.s32.totalorder %s1007_s23, %s1354_s5 }
 0x360   : > { %p1009_p11 = scmp.ne.s32.totalorder %s1007_s23, %s1008_s24  ;;  %p1014_p1 = scmp.lt.s32.totalorder %s1012_s28, %s1008_s24 }
 0x362   : > { %p1010_p12 = pnand %p1009_p11, %p1173_p3  ;;  %p1015_p2 = por %p1014_p1, %p1013_p0 }
 0x364   : > { %p1011_p13 = pneg %p1010_p12 }
 0x366   : > { %p1016_p4 = pnand %p1015_p2, %p1011_p13 }
 0x368   : > { %1019 = shalt.err (!%p1016_p4)
}
 0x369   : > { %861 = dma.vmem_to_hbm [thread:$0]  (%p1173_p3), %s664_s15, 16, %s666_s19, %s639_s20  }
 0x36a PF: > { %p871_p5 = scmp.ge.s32.totalorder %s1090_s25, 2  ;;  %s677_s22 = sand.u32 1, %s1062_s18  }
 0x36b   : > { %s678_s10 = scalar_lea.sflag [#allocation5], %s677_s22 }
 0x36c   : > { %p865_p6 = pnand %p871_p5, %p1183_p9 }
 0x36e   : > { %p866_p7 = pneg %p865_p6 }
 0x370   : > { %1053 = dma.done.wait (%p866_p7), %s678_s10, 128  }
 0x371   : > { %1055 = vsyncadd (%p866_p7), %s678_s10, 4294967168  ;;  %s688_s14 = scalar_lea.sflag [#allocation7], %s677_s22 }
 0x372   : > { %1057 = dma.done.wait (%p866_p7), %s688_s14, 16  }
 0x373   : > { %1059 = vsyncadd (%p866_p7), %s688_s14, 4294967280  ;;  %s22_s25 = sadd.s32 1, %s1090_s25   ;;  %s1369_s18 = sld [smem:[#allocation10_spill]] }
 0x374   : > { %p19_p8 = scmp.ge.s32.totalorder %s22_s25, 6   ;;  %s1370_s19 = sld [smem:[#allocation11_spill]] }
 0x375   : > { %s1371_s20 = sld [smem:[#allocation16_spill]] }
 0x376   : > { %s1372_s21 = sld [smem:[#allocation12_spill]]  ;;  %21 = sbr.rel (!%p19_p8) target bundleno = 7 (0x7), region = 106 }
 0x377   : > { %s1373_s22 = sld [smem:[#allocation13_spill]] }
 0x378   : > { %s1374_s23 = sld [smem:[#allocation14_spill]] }
 0x379   : > { %s1375_s24 = sld [smem:[#allocation15_spill]] }
 0x37b   :  { %693 = vsyncpa [#allocation5], 1 }
 0x37c   :  { %695 = vsyncpa [#allocation5 + $0x1], 1 }
 0x37d   :  { %696 = vsyncpa [#allocation7], 1 }
 0x37e   :  { %698 = vsyncpa [#allocation7 + $0x1], 1 }

</bundles_post_ra>
